<compile_context>
chip_gen: v6e
topology: v6e:2x2x1
jax: 0.10.0
libtpu: 0.0.40
codegen_flags: <defaults>
</compile_context>

<pallas_src>
import jax
import jax.numpy as jnp
from jax.experimental import pallas as pl
from jax.experimental.pallas import tpu as pltpu


_LANES = 128
_MAX_DMA_CHUNKS = 8            # max concurrent HBM->HBM DMA streams for big copies
_MIN_CHUNK_BYTES = 512 * 1024  # never split a copy into pieces smaller than this


def _choose_slab(total):
    """Widest lane-dense (R, L) factorization of `total`, or None if odd-sized."""
    for lanes in (2048, 1024, 512, 256, _LANES):
        if total % lanes == 0:
            return total // lanes, lanes
    return None


def _choose_num_chunks(rows, row_bytes):
    """Split the slab into up to 8 equal row chunks, each >= _MIN_CHUNK_BYTES."""
    total_bytes = rows * row_bytes
    for n in (_MAX_DMA_CHUNKS, 4, 2):
        if rows % n == 0 and total_bytes // n >= _MIN_CHUNK_BYTES:
            return n
    return 1


def _make_copy_kernel(num_chunks, chunk_rows):
    def _copy_kernel(x_hbm, o_hbm, sems):
        # Pure HBM->HBM copy: start every chunk DMA, then wait on all of them,
        # so all streams are in flight concurrently.
        copies = []
        for i in range(num_chunks):
            rows = pl.ds(i * chunk_rows, chunk_rows)
            copies.append(
                pltpu.make_async_copy(x_hbm.at[rows], o_hbm.at[rows], sems.at[i])
            )
        for c in copies:
            c.start()
        for c in copies:
            c.wait()

    return _copy_kernel


def _pallas_copy_slab(flat_2d):
    """Copy a lane-dense (R, L) slab with direct HBM->HBM DMA (no VMEM staging)."""
    R, L = flat_2d.shape
    itemsize = jnp.dtype(flat_2d.dtype).itemsize
    num_chunks = _choose_num_chunks(R, L * itemsize)
    kernel = _make_copy_kernel(num_chunks, R // num_chunks)
    return pl.pallas_call(
        kernel,
        out_shape=jax.ShapeDtypeStruct((R, L), flat_2d.dtype),
        in_specs=[pl.BlockSpec(memory_space=pl.ANY)],
        out_specs=pl.BlockSpec(memory_space=pl.ANY),
        scratch_shapes=[pltpu.SemaphoreType.DMA((num_chunks,))],
        cost_estimate=pl.CostEstimate(
            flops=0,
            transcendentals=0,
            bytes_accessed=2 * R * L * itemsize,  # pure read + write, no FLOPs
        ),
    )(flat_2d)


def view(x, shape):
    """Pallas-backed equivalent of torch `input.view(*shape)`.

    Supports a single -1 wildcard like torch.view. Tensors whose element count
    is not a multiple of 128 skip the kernel copy and use a pure metadata
    reshape (identical values, zero data movement).
    """
    total = x.size
    shape = list(shape)
    if -1 in shape:
        idx = shape.index(-1)
        known = 1
        for s in shape:
            if s != -1:
                known *= s
        shape[idx] = total // known
    prod = 1
    for s in shape:
        prod *= s
    assert prod == total, f"cannot view {x.shape} as {tuple(shape)}"

    slab = _choose_slab(total)
    if slab is not None:
        R, L = slab
        flat = x.reshape(R, L)           # byte-identical row-major flattening
        copied = _pallas_copy_slab(flat)
        return copied.reshape(tuple(shape))
    # TODO(synk): tiny/odd-sized tensors skip the kernel copy (pure metadata reshape).
    return x.reshape(tuple(shape))


class View:
    """Mirror of the PyTorch View module: stores the target shape."""

    def __init__(self, shape):
        self.shape = tuple(shape)

    def __call__(self, x):
        return view(x, self.shape)


if __name__ == "__main__":
    key = jax.random.PRNGKey(0)
    # NCHW-style input, typical use of View: flatten conv features per batch.
    x = jax.random.normal(key, (2, 4, 16, 16), dtype=jnp.float32)

    mod = View((2, -1))                  # matches torch x.view(2, -1)
    y = mod(x)
    y = jax.block_until_ready(y)

    # Reference: plain row-major reshape (identical semantics to torch .view
    # on a contiguous tensor).
    y_ref = x.reshape(2, -1)
    assert y.shape == (2, 1024), y.shape
    assert y.dtype == x.dtype
    assert bool(jnp.array_equal(y, y_ref))

    # Larger path: exercises the multi-chunk concurrent-DMA branch (bf16).
    x2 = jax.random.normal(jax.random.PRNGKey(1), (8, 64, 32, 32),
                           dtype=jnp.bfloat16)
    y2 = jax.block_until_ready(view(x2, (8, -1)))
    assert y2.shape == (8, 64 * 32 * 32)
    assert bool(jnp.array_equal(y2, x2.reshape(8, -1)))

    # Odd-sized tensor: metadata-only fallback path.
    x3 = jax.random.normal(jax.random.PRNGKey(2), (3, 5, 7), dtype=jnp.float32)
    y3 = jax.block_until_ready(view(x3, (-1,)))
    assert y3.shape == (105,)
    assert bool(jnp.array_equal(y3, x3.reshape(-1)))

    print("KERNEL_OK")
</pallas_src>

<mosaic_0001>
module attributes {stable_mosaic.version = 11 : i64} {
  func.func @_copy_kernel(%arg0: memref<1x2048xf32, #tpu.memory_space<any>>, %arg1: memref<1x2048xf32, #tpu.memory_space<any>>, %arg2: memref<1x!tpu.dma_semaphore, #tpu.memory_space<semaphore_mem>>) attributes {dimension_semantics = [], scalar_prefetch = 0 : i64, scratch_operands = 1 : i64, tpu.core_type = #tpu.core_type<tc>} {
    %c0_i32 = arith.constant 0 : i32
    %c0_i32_0 = arith.constant 0 : i32
    %c0_i32_1 = arith.constant 0 : i32
    %0 = tpu.memref_slice %arg0[%c0_i32_0, %c0_i32_1] : memref<1x2048xf32, #tpu.memory_space<any>> -> memref<1x2048xf32, #tpu.memory_space<any>>
    %c0_i32_2 = arith.constant 0 : i32
    %c0_i32_3 = arith.constant 0 : i32
    %1 = tpu.memref_slice %arg1[%c0_i32_2, %c0_i32_3] : memref<1x2048xf32, #tpu.memory_space<any>> -> memref<1x2048xf32, #tpu.memory_space<any>>
    %2 = tpu.memref_slice %arg2[%c0_i32] : memref<1x!tpu.dma_semaphore, #tpu.memory_space<semaphore_mem>> -> memref<1x!tpu.dma_semaphore, #tpu.memory_space<semaphore_mem>>
    %3 = tpu.memref_squeeze %2 : memref<1x!tpu.dma_semaphore, #tpu.memory_space<semaphore_mem>> -> memref<!tpu.dma_semaphore, #tpu.memory_space<semaphore_mem>>
    tpu.enqueue_dma source(%0 : memref<1x2048xf32, #tpu.memory_space<any>>) target(%1 : memref<1x2048xf32, #tpu.memory_space<any>>) target_semaphore(%3 : memref<!tpu.dma_semaphore, #tpu.memory_space<semaphore_mem>>)
    %c0_i32_4 = arith.constant 0 : i32
    %c0_i32_5 = arith.constant 0 : i32
    %c0_i32_6 = arith.constant 0 : i32
    %4 = tpu.memref_slice %arg0[%c0_i32_5, %c0_i32_6] : memref<1x2048xf32, #tpu.memory_space<any>> -> memref<1x2048xf32, #tpu.memory_space<any>>
    %c0_i32_7 = arith.constant 0 : i32
    %c0_i32_8 = arith.constant 0 : i32
    %5 = tpu.memref_slice %arg1[%c0_i32_7, %c0_i32_8] : memref<1x2048xf32, #tpu.memory_space<any>> -> memref<1x2048xf32, #tpu.memory_space<any>>
    %6 = tpu.memref_slice %arg2[%c0_i32_4] : memref<1x!tpu.dma_semaphore, #tpu.memory_space<semaphore_mem>> -> memref<1x!tpu.dma_semaphore, #tpu.memory_space<semaphore_mem>>
    %7 = tpu.memref_squeeze %6 : memref<1x!tpu.dma_semaphore, #tpu.memory_space<semaphore_mem>> -> memref<!tpu.dma_semaphore, #tpu.memory_space<semaphore_mem>>
    tpu.wait_dma2 semaphore(%7 : memref<!tpu.dma_semaphore, #tpu.memory_space<semaphore_mem>>) src(%4 : memref<1x2048xf32, #tpu.memory_space<any>>) dst(%5 : memref<1x2048xf32, #tpu.memory_space<any>>)
    return
  }
}

</mosaic_0001>

<bundles_post_ra>
// kernel: tpu_custom_call.1
= control target key start
LH: loop header
LB: loop body
LE: loop exit
PB: predicated region body
PF: predicated region fallthrough
CT: control target
= control target key end

     0   :  { %s28_s6 = smov [#allocation2]   ;;  %s29_s7 = smov 131072   ;;  %s47_s0 = inlined_call_operand.hbm [shape: f32[1,2048], index: 0, kind: input, shape index: {}]   ;;  %s48_s1 = inlined_call_operand.hbm [shape: f32[1,2048], index: 1, kind: output, shape index: {}]  }
   0x1   :  { %s30_s8 = smov 0  }
   0x2   :  { %12 = dma.general %s47_s0, 256, %s48_s1, %s28_s6, %s29_s7, [#allocation4], %s30_s8, 0  }
   0x3   :  { %26 = dma.done.wait [#allocation2], 256 }
   0x4   :  { %27 = vsyncadd [#allocation2], 4294967040 }
   0x5   :  { %16 = vsyncmov [#allocation2] }
   0x8   :  { %s17_s13 = vpop.sfrf %16 }
   0x9   :  { %p22_p0 = scmp.ne.s32.totalorder %s17_s13, 0 }
   0xb   :  { %21 = shalt.err (%p22_p0)  }

</bundles_post_ra>
